<compile_context>
chip_gen: v5e
topology: v5e:2x2
jax: 0.10.0
libtpu: 0.0.40
codegen_flags: <defaults>
</compile_context>

<pallas_src>
import functools

import jax
import jax.numpy as jnp
from jax.experimental import pallas as pl
from jax.experimental.pallas import tpu as pltpu


def _layer_scale_kernel(x_ref, g_ref, o_ref):
    # (tm, D) * (1, D) -> (tm, D), pure VPU elementwise, memory-bound.
    o_ref[...] = (x_ref[...] * g_ref[...]).astype(o_ref.dtype)


def _round_up(n, m):
    return (n + m - 1) // m * m


@functools.partial(jax.jit, static_argnames=("tm",))
def layer_scale_pallas(x, gamma, *, tm=256):
    """LayerScale forward: y = x * gamma, gamma broadcast over the last dim.

    x: (..., D) float array.  gamma: (D,) parameter.
    """
    orig_shape = x.shape
    D = orig_shape[-1]
    M = 1
    for s in orig_shape[:-1]:
        M *= s

    x2d = x.reshape(M, D)
    g2d = gamma.astype(x.dtype).reshape(1, D)

    # Row tile: big enough to amortize ~0.35us/step grid overhead and keep DMAs large,
    # but never bigger than the (8-aligned) token count for small inputs.
    tm_eff = min(tm, _round_up(M, 8))
    m_pad = _round_up(M, tm_eff)
    if m_pad != M:
        x2d = jnp.pad(x2d, ((0, m_pad - M), (0, 0)))

    itemsize = jnp.dtype(x.dtype).itemsize
    cost = pl.CostEstimate(
        flops=M * D,
        transcendentals=0,
        bytes_accessed=(2 * M * D + D) * itemsize,
    )

    out2d = pl.pallas_call(
        _layer_scale_kernel,
        out_shape=jax.ShapeDtypeStruct((m_pad, D), x.dtype),
        grid_spec=pltpu.PrefetchScalarGridSpec(
            num_scalar_prefetch=0,
            grid=(m_pad // tm_eff,),
            in_specs=[
                pl.BlockSpec((tm_eff, D), lambda i: (i, 0)),  # x row tile
                pl.BlockSpec((1, D), lambda i: (0, 0)),       # gamma, VMEM-resident
            ],
            out_specs=pl.BlockSpec((tm_eff, D), lambda i: (i, 0)),
        ),
        compiler_params=pltpu.CompilerParams(
            dimension_semantics=("parallel",),
            vmem_limit_bytes=64 * 1024 * 1024,
        ),
        cost_estimate=cost,
    )(x2d, g2d)

    if m_pad != M:
        out2d = out2d[:M]
    return out2d.reshape(orig_shape)


def layer_scale_reference(x, gamma):
    return x * gamma


if __name__ == "__main__":
    # Small shapes consistent with the module: tokens (B, N, dim); dim kept lane-dense.
    batch, seq, dim = 2, 8, 128
    init_values = 1e-5

    key = jax.random.PRNGKey(0)
    kx, kg = jax.random.split(key, 2)

    x = jax.random.normal(kx, (batch, seq, dim), dtype=jnp.float32)
    # Deterministic per-channel gamma (module init is init_values * ones; perturb slightly
    # so a broadcast-axis bug would be caught).
    gamma = init_values * (1.0 + 0.1 * jax.random.normal(kg, (dim,), dtype=jnp.float32))

    out = layer_scale_pallas(x, gamma)
    out = jax.block_until_ready(out)

    ref = layer_scale_reference(x, gamma)
    assert out.shape == (batch, seq, dim)
    assert jnp.allclose(out, ref, atol=1e-8, rtol=1e-6), "mismatch vs reference"

    print("KERNEL_OK")
</pallas_src>

<mosaic_0001>
module attributes {stable_mosaic.version = 11 : i64} {
  func.func @_layer_scale_kernel(%arg0: i32, %arg1: memref<16x128xf32, #tpu.memory_space<vmem>>, %arg2: memref<1x128xf32, #tpu.memory_space<vmem>>, %arg3: memref<16x128xf32, #tpu.memory_space<vmem>>) attributes {dimension_semantics = [#tpu.dimension_semantics<parallel>], iteration_bounds = array<i64: 1>, scalar_prefetch = 0 : i64, scratch_operands = 0 : i64, tpu.core_type = #tpu.core_type<tc>, window_params = [{transform_indices = @transform_0, window_bounds = array<i64: 16, 128>}, {pipeline_mode = #tpu.pipeline_mode<synchronous>, transform_indices = @transform_1, window_bounds = array<i64: 1, 128>}, {transform_indices = @transform_2, window_bounds = array<i64: 16, 128>}]} {
    %c0 = arith.constant 0 : index
    %c0_0 = arith.constant 0 : index
    %0 = vector.load %arg1[%c0, %c0_0] : memref<16x128xf32, #tpu.memory_space<vmem>>, vector<16x128xf32>
    %c0_1 = arith.constant 0 : index
    %c0_2 = arith.constant 0 : index
    %1 = vector.load %arg2[%c0_1, %c0_2] : memref<1x128xf32, #tpu.memory_space<vmem>>, vector<1x128xf32>
    %2 = vector.broadcast %1 : vector<1x128xf32> to vector<16x128xf32>
    %3 = arith.mulf %0, %2 : vector<16x128xf32>
    %c0_3 = arith.constant 0 : index
    %c0_4 = arith.constant 0 : index
    %4 = vector.load %arg3[%c0_3, %c0_4] : memref<16x128xf32, #tpu.memory_space<vmem>>, vector<16x128xf32>
    tpu.vector_store %arg3[%c0_3, %c0_4], %3 {strides = array<i32>} : memref<16x128xf32, #tpu.memory_space<vmem>>, vector<16x128xf32>,
    return
  }
  func.func @transform_0(%arg0: i32) -> (i32, i32) {
    %c0_i32 = arith.constant 0 : i32
    %c0_i32_0 = arith.constant 0 : i32
    return %arg0, %c0_i32 : i32, i32
  }
  func.func @transform_1(%arg0: i32) -> (i32, i32) {
    %c0_i32 = arith.constant 0 : i32
    %c0_i32_0 = arith.constant 0 : i32
    %c0_i32_1 = arith.constant 0 : i32
    return %c0_i32, %c0_i32_0 : i32, i32
  }
  func.func @transform_2(%arg0: i32) -> (i32, i32) {
    %c0_i32 = arith.constant 0 : i32
    %c0_i32_0 = arith.constant 0 : i32
    return %arg0, %c0_i32 : i32, i32
  }
}

</mosaic_0001>

<bundles_post_ra>
// kernel: layer_scale_pallas.1
= control target key start
LH: loop header
LB: loop body
LE: loop exit
PB: predicated region body
PF: predicated region fallthrough
CT: control target
= control target key end

     0   :  { %7 = vsyncpa [#allocation3], 0  ;;  %s142_s0 = inlined_call_operand.hbm [shape: f32[16,128], index: 0, kind: input, shape index: {}]   ;;  %s143_s1 = inlined_call_operand.vmem [shape: f32[1,128], index: 1, kind: input, shape index: {}]   ;;  %s144_s2 = inlined_call_operand.hbm [shape: f32[16,128], index: 2, kind: output, shape index: {}]  }
   0x1   :  { %8 = vsyncpa [#allocation4], 0  ;;  %s13_s11 = sshll.u32 %s142_s0, 4  ;;  %s114_s12 = smov [#allocation2]   ;;  %s14_s11 = int_to_ptr.hbm [resolvable:$true] %s13_s11 }
   0x2   :  { %s15_s13 = sshll.u32 %s114_s12, 4  ;;  %s115_s14 = smov 128   ;;  %s16_s13 = int_to_ptr.vmem [resolvable:$true] %s15_s13 }
   0x3   :  { %s116_s15 = smov 8  }
   0x4   :  { %21 = dma.hbm_to_vmem [thread:$0]  %s14_s11, 256, %s16_s13, [#allocation3], %s115_s14, %s115_s14, %s116_s15  }
   0x5   :  { %110 = dma.done.wait [#allocation3], 256  }
   0x6   :  { %111 = vsyncadd [#allocation3], 4294967040  ;;  %s44_s18 = sshll.u32 %s144_s2, 4  ;;  %v28_v0 = vld [vmem:[#allocation2] sm:$0xff]  ;;  %s117_s21 = smov [#allocation5]   ;;  %v29_v2 = vld [vmem:[#allocation2 + $0x8] sm:$0xff]  ;;  %s45_s18 = int_to_ptr.hbm [resolvable:$true] %s44_s18 }
   0x7   :  { %v61_v1 = vld [vmem:[%s143_s1] ss:$0 sm:$0xff]  ;;  %s42_s0 = sshll.u32 %s117_s21, 4  ;;  %s43_s0 = int_to_ptr.vmem [resolvable:$true] %s42_s0 }
   0x8   :  { %v34_v3 = vmul.f32 %v61_v1, %v28_v0  ;;  %v35_v4 = vmul.f32 %v61_v1, %v29_v2 }
   0xa   :  { %36 = vst [vmem:[#allocation5] sm:$0xff] %v34_v3 }
   0xb   :  { %37 = vst [vmem:[#allocation5 + $0x8] sm:$0xff] %v35_v4 }
   0xc   :  { %50 = dma.vmem_to_hbm [thread:$0]  %s43_s0, 256, %s45_s18, [#allocation4], %s115_s14, %s115_s14, %s116_s15  }
   0xd   :  { %112 = dma.done.wait [#allocation4], 256  }
   0xe   :  { %113 = vsyncadd [#allocation4], 4294967040 }
   0xf   :  { %55 = vsyncpa [#allocation3], 1 }
  0x10   :  { %56 = vsyncpa [#allocation4], 1 }

</bundles_post_ra>
